<compile_context>
chip_gen: v7x
topology: tpu7x:2x2x1
jax: 0.10.0
libtpu: 0.0.40
codegen_flags: <defaults>
</compile_context>

<pallas_src>
import functools

import jax
import jax.numpy as jnp
from jax.experimental import pallas as pl
from jax.experimental.pallas import tpu as pltpu


def _round_up(x, m):
    return (x + m - 1) // m * m


def _centerloss_kernel(feat_ref, ys_ref, w_ref, center_ref, out_ref, *,
                       num_classes, num_dims):
    """One (R, 128) batch slab: gather centers, squared distance, weighted acc.

    feat_ref:   (D, R, 128) f32 VMEM block (feature-major, batch lane-dense)
    ys_ref:     (R, 128)    i32 VMEM block (label per sample, -1 on padding)
    w_ref:      (R, 128)    f32 VMEM block (1/count[ys], 0 on padding)
    center_ref: (C*D,)      f32 SMEM table (whole, unblocked)
    out_ref:    (R, 128)    f32 per-part accumulator (resident across the
                            "arbitrary" batch axis; written back once per part)
    """
    # Zero the per-part accumulator on the first reduction step.
    @pl.when(pl.program_id(1) == 0)
    def _():
        out_ref[...] = jnp.zeros_like(out_ref)

    ys = ys_ref[...]                                  # (R, 128) int32
    w = w_ref[...]                                    # (R, 128) f32

    # Masked center gather.  Classes are mutually exclusive per sample, so a
    # single select per (class, dim) builds center_exp; masks are never kept
    # live across the class loop -> bounded vreg pressure (~D accumulators).
    cexp = [jnp.zeros(ys.shape, jnp.float32) for _ in range(num_dims)]
    for c in range(num_classes):
        m = ys == c                                   # bool mask, reused for D dims
        for d in range(num_dims):
            cexp[d] = jnp.where(m, center_ref[c * num_dims + d], cexp[d])

    # Squared distance over the feature dimension.
    sq = jnp.zeros(ys.shape, jnp.float32)
    for d in range(num_dims):
        diff = feat_ref[d] - cexp[d]                  # (R, 128)
        sq = sq + diff * diff

    # Defer the cross-lane reduce: elementwise accumulate only (VALU), the
    # single final XLU/XLA reduce happens once in the wrapper.
    out_ref[...] = out_ref[...] + sq * w


def centerloss(features, ys, center, lambdas=2.0, *, num_parts=2,
               max_tile_n=32768):
    n, nd = features.shape
    nc, nd2 = center.shape
    assert nd == nd2

    # ---- Hoisted histogram: per-sample weight 1/count[ys] -------------------
    # count is a *global-batch* quantity (torch.histc over the whole batch);
    # computing it here (cheap scatter-add) is what makes N-tiling correct.
    ys_i = ys.astype(jnp.int32)
    count = jnp.zeros((nc,), jnp.float32).at[ys_i].add(1.0)
    w = 1.0 / count[ys_i]                             # every present label has count>=1

    # ---- Batch padding / tiling ---------------------------------------------
    # tile_n is a multiple of 8*128 so every block is fully sublane+lane dense.
    per_part = -(-n // num_parts)
    tile_n = min(_round_up(max(per_part, 1), 1024), max_tile_n)
    tiles_per_part = -(-per_part // tile_n)
    n_pad = num_parts * tiles_per_part * tile_n
    rows = tile_n // 128                              # sublane rows per block
    pad = n_pad - n

    # TODO(synk): for production N, produce features feature-major (D, N)
    # upstream so this transpose (a full extra HBM round trip) disappears.
    feat_t = jnp.pad(features.astype(jnp.float32), ((0, pad), (0, 0))).T
    feat_t = feat_t.reshape(nd, n_pad // 128, 128)    # free (metadata) reshape
    ys_p = jnp.pad(ys_i, (0, pad), constant_values=-1).reshape(n_pad // 128, 128)
    w_p = jnp.pad(w, (0, pad)).reshape(n_pad // 128, 128)   # 0 weight on padding
    center_flat = center.astype(jnp.float32).reshape(-1)    # (C*D,) SMEM table

    kernel = functools.partial(_centerloss_kernel, num_classes=nc, num_dims=nd)

    cost = pl.CostEstimate(
        flops=int(n_pad * (nc * (nd + 1) + 3 * nd + 2)),
        transcendentals=0,
        bytes_accessed=int((feat_t.size + ys_p.size + w_p.size
                            + center_flat.size + num_parts * tile_n) * 4),
    )

    grid_spec = pltpu.PrefetchScalarGridSpec(
        num_scalar_prefetch=0,
        grid=(num_parts, tiles_per_part),
        in_specs=[
            # (D, R, 128) feature slab for (part p, batch tile b)
            pl.BlockSpec((nd, rows, 128),
                         lambda p, b: (0, p * tiles_per_part + b, 0)),
            # (R, 128) labels
            pl.BlockSpec((rows, 128),
                         lambda p, b: (p * tiles_per_part + b, 0)),
            # (R, 128) per-sample weights
            pl.BlockSpec((rows, 128),
                         lambda p, b: (p * tiles_per_part + b, 0)),
            # Whole (C*D,) center table, resident in SMEM (scalar reads).
            pl.BlockSpec(memory_space=pltpu.MemorySpace.SMEM),
        ],
        # One lane-dense accumulator block per part; block index is constant
        # along the "arbitrary" batch axis -> VMEM-resident accumulator.
        out_specs=pl.BlockSpec((None, rows, 128), lambda p, b: (p, 0, 0)),
    )

    partial = pl.pallas_call(
        kernel,
        out_shape=jax.ShapeDtypeStruct((num_parts, rows, 128), jnp.float32),
        grid_spec=grid_spec,
        compiler_params=pltpu.CompilerParams(
            dimension_semantics=("parallel", "arbitrary")),
        cost_estimate=cost,
    )(feat_t, ys_p, w_p, center_flat)

    # Final tiny reduce + lambdas/2 * mean-over-real-samples scale.
    return jnp.sum(partial) * (float(lambdas) * 0.5 / float(n))


def centerloss_ref(features, ys, center, lambdas=2.0):
    """Plain-JAX reference mirroring the PyTorch forward."""
    ys = ys.astype(jnp.int32)
    center_exp = center[ys]                                   # (N, D)
    one_hot = jax.nn.one_hot(ys, center.shape[0], dtype=jnp.float32)
    count = jnp.sum(one_hot, axis=0)                          # (C,)
    count_exp = count[ys]                                     # (N,)
    sq = jnp.sum((features - center_exp) ** 2, axis=1)
    return (lambdas / 2.0) * jnp.mean(sq / count_exp)


if __name__ == "__main__":
    key = jax.random.PRNGKey(0)
    k_center, k_feat, k_ys = jax.random.split(key, 3)

    # Deterministic synthetic parameters/inputs (center ~ torch.randn(10, 2)).
    center = jax.random.normal(k_center, (10, 2), dtype=jnp.float32)
    features = jax.random.normal(k_feat, (8, 2), dtype=jnp.float32)
    ys = jax.random.randint(k_ys, (8,), minval=0, maxval=10, dtype=jnp.int32)

    loss = centerloss(features, ys, center, lambdas=2.0)
    jax.block_until_ready(loss)

    ref = centerloss_ref(features, ys, center, lambdas=2.0)
    assert jnp.allclose(loss, ref, rtol=1e-5, atol=1e-5), (loss, ref)

    print("KERNEL_OK")
</pallas_src>

<mosaic_0001>
module attributes {stable_mosaic.version = 11 : i64} {
  func.func @_centerloss_kernel(%arg0: i32, %arg1: i32, %arg2: memref<2x8x128xf32, #tpu.memory_space<vmem>>, %arg3: memref<8x128xi32, #tpu.memory_space<vmem>>, %arg4: memref<8x128xf32, #tpu.memory_space<vmem>>, %arg5: memref<20xf32, #tpu.memory_space<smem>>, %arg6: memref<1x8x128xf32, #tpu.memory_space<vmem>>) attributes {dimension_semantics = [#tpu.dimension_semantics<parallel>, #tpu.dimension_semantics<arbitrary>], iteration_bounds = array<i64: 2, 1>, scalar_prefetch = 0 : i64, scratch_operands = 0 : i64, tpu.core_type = #tpu.core_type<tc>, window_params = [{transform_indices = @transform_0, window_bounds = array<i64: 2, 8, 128>}, {transform_indices = @transform_1, window_bounds = array<i64: 8, 128>}, {transform_indices = @transform_2, window_bounds = array<i64: 8, 128>}, {transform_indices = @transform_3, window_bounds = array<i64: 20>}, {transform_indices = @transform_4, window_bounds = array<i64: 1, 8, 128>}]} {
    %c0_i32 = arith.constant 0 : i32
    %0 = arith.cmpi eq, %arg1, %c0_i32 : i32
    %1 = arith.extui %0 : i1 to i32
    %c0_i32_0 = arith.constant 0 : i32
    %2 = arith.cmpi ne, %1, %c0_i32_0 : i32
    scf.if %2 {
      %cst_20 = arith.constant 0.000000e+00 : f32
      %105 = vector.broadcast %cst_20 : f32 to vector<8x128xf32>
      %c0_21 = arith.constant 0 : index
      %c0_22 = arith.constant 0 : index
      %c0_23 = arith.constant 0 : index
      %106 = vector.load %arg6[%c0_21, %c0_22, %c0_23] : memref<1x8x128xf32, #tpu.memory_space<vmem>>, vector<1x8x128xf32>
      %107 = vector.shape_cast %106 : vector<1x8x128xf32> to vector<8x128xf32>
      %108 = vector.shape_cast %105 : vector<8x128xf32> to vector<1x8x128xf32>
      tpu.vector_store %arg6[%c0_21, %c0_22, %c0_23], %108 {strides = array<i32>} : memref<1x8x128xf32, #tpu.memory_space<vmem>>, vector<1x8x128xf32>,
    } else {
    }
    %c0 = arith.constant 0 : index
    %c0_1 = arith.constant 0 : index
    %3 = vector.load %arg3[%c0, %c0_1] : memref<8x128xi32, #tpu.memory_space<vmem>>, vector<8x128xi32>
    %c0_2 = arith.constant 0 : index
    %c0_3 = arith.constant 0 : index
    %4 = vector.load %arg4[%c0_2, %c0_3] : memref<8x128xf32, #tpu.memory_space<vmem>>, vector<8x128xf32>
    %cst = arith.constant 0.000000e+00 : f32
    %5 = vector.broadcast %cst : f32 to vector<8x128xf32>
    %cst_4 = arith.constant 0.000000e+00 : f32
    %6 = vector.broadcast %cst_4 : f32 to vector<8x128xf32>
    %c0_i32_5 = arith.constant 0 : i32
    %7 = vector.broadcast %c0_i32_5 : i32 to vector<8x128xi32>
    %8 = arith.cmpi eq, %3, %7 : vector<8x128xi32>
    %c0_6 = arith.constant 0 : index
    %9 = memref.load %arg5[%c0_6] : memref<20xf32, #tpu.memory_space<smem>>
    %10 = vector.broadcast %9 : f32 to vector<8x128xf32>
    %11 = arith.select %8, %10, %5 : vector<8x128xi1>, vector<8x128xf32>
    %c1 = arith.constant 1 : index
    %12 = memref.load %arg5[%c1] : memref<20xf32, #tpu.memory_space<smem>>
    %13 = vector.broadcast %12 : f32 to vector<8x128xf32>
    %14 = arith.select %8, %13, %6 : vector<8x128xi1>, vector<8x128xf32>
    %c1_i32 = arith.constant 1 : i32
    %15 = vector.broadcast %c1_i32 : i32 to vector<8x128xi32>
    %16 = arith.cmpi eq, %3, %15 : vector<8x128xi32>
    %c2 = arith.constant 2 : index
    %17 = memref.load %arg5[%c2] : memref<20xf32, #tpu.memory_space<smem>>
    %18 = vector.broadcast %17 : f32 to vector<8x128xf32>
    %19 = arith.select %16, %18, %11 : vector<8x128xi1>, vector<8x128xf32>
    %c3 = arith.constant 3 : index
    %20 = memref.load %arg5[%c3] : memref<20xf32, #tpu.memory_space<smem>>
    %21 = vector.broadcast %20 : f32 to vector<8x128xf32>
    %22 = arith.select %16, %21, %14 : vector<8x128xi1>, vector<8x128xf32>
    %c2_i32 = arith.constant 2 : i32
    %23 = vector.broadcast %c2_i32 : i32 to vector<8x128xi32>
    %24 = arith.cmpi eq, %3, %23 : vector<8x128xi32>
    %c4 = arith.constant 4 : index
    %25 = memref.load %arg5[%c4] : memref<20xf32, #tpu.memory_space<smem>>
    %26 = vector.broadcast %25 : f32 to vector<8x128xf32>
    %27 = arith.select %24, %26, %19 : vector<8x128xi1>, vector<8x128xf32>
    %c5 = arith.constant 5 : index
    %28 = memref.load %arg5[%c5] : memref<20xf32, #tpu.memory_space<smem>>
    %29 = vector.broadcast %28 : f32 to vector<8x128xf32>
    %30 = arith.select %24, %29, %22 : vector<8x128xi1>, vector<8x128xf32>
    %c3_i32 = arith.constant 3 : i32
    %31 = vector.broadcast %c3_i32 : i32 to vector<8x128xi32>
    %32 = arith.cmpi eq, %3, %31 : vector<8x128xi32>
    %c6 = arith.constant 6 : index
    %33 = memref.load %arg5[%c6] : memref<20xf32, #tpu.memory_space<smem>>
    %34 = vector.broadcast %33 : f32 to vector<8x128xf32>
    %35 = arith.select %32, %34, %27 : vector<8x128xi1>, vector<8x128xf32>
    %c7 = arith.constant 7 : index
    %36 = memref.load %arg5[%c7] : memref<20xf32, #tpu.memory_space<smem>>
    %37 = vector.broadcast %36 : f32 to vector<8x128xf32>
    %38 = arith.select %32, %37, %30 : vector<8x128xi1>, vector<8x128xf32>
    %c4_i32 = arith.constant 4 : i32
    %39 = vector.broadcast %c4_i32 : i32 to vector<8x128xi32>
    %40 = arith.cmpi eq, %3, %39 : vector<8x128xi32>
    %c8 = arith.constant 8 : index
    %41 = memref.load %arg5[%c8] : memref<20xf32, #tpu.memory_space<smem>>
    %42 = vector.broadcast %41 : f32 to vector<8x128xf32>
    %43 = arith.select %40, %42, %35 : vector<8x128xi1>, vector<8x128xf32>
    %c9 = arith.constant 9 : index
    %44 = memref.load %arg5[%c9] : memref<20xf32, #tpu.memory_space<smem>>
    %45 = vector.broadcast %44 : f32 to vector<8x128xf32>
    %46 = arith.select %40, %45, %38 : vector<8x128xi1>, vector<8x128xf32>
    %c5_i32 = arith.constant 5 : i32
    %47 = vector.broadcast %c5_i32 : i32 to vector<8x128xi32>
    %48 = arith.cmpi eq, %3, %47 : vector<8x128xi32>
    %c10 = arith.constant 10 : index
    %49 = memref.load %arg5[%c10] : memref<20xf32, #tpu.memory_space<smem>>
    %50 = vector.broadcast %49 : f32 to vector<8x128xf32>
    %51 = arith.select %48, %50, %43 : vector<8x128xi1>, vector<8x128xf32>
    %c11 = arith.constant 11 : index
    %52 = memref.load %arg5[%c11] : memref<20xf32, #tpu.memory_space<smem>>
    %53 = vector.broadcast %52 : f32 to vector<8x128xf32>
    %54 = arith.select %48, %53, %46 : vector<8x128xi1>, vector<8x128xf32>
    %c6_i32 = arith.constant 6 : i32
    %55 = vector.broadcast %c6_i32 : i32 to vector<8x128xi32>
    %56 = arith.cmpi eq, %3, %55 : vector<8x128xi32>
    %c12 = arith.constant 12 : index
    %57 = memref.load %arg5[%c12] : memref<20xf32, #tpu.memory_space<smem>>
    %58 = vector.broadcast %57 : f32 to vector<8x128xf32>
    %59 = arith.select %56, %58, %51 : vector<8x128xi1>, vector<8x128xf32>
    %c13 = arith.constant 13 : index
    %60 = memref.load %arg5[%c13] : memref<20xf32, #tpu.memory_space<smem>>
    %61 = vector.broadcast %60 : f32 to vector<8x128xf32>
    %62 = arith.select %56, %61, %54 : vector<8x128xi1>, vector<8x128xf32>
    %c7_i32 = arith.constant 7 : i32
    %63 = vector.broadcast %c7_i32 : i32 to vector<8x128xi32>
    %64 = arith.cmpi eq, %3, %63 : vector<8x128xi32>
    %c14 = arith.constant 14 : index
    %65 = memref.load %arg5[%c14] : memref<20xf32, #tpu.memory_space<smem>>
    %66 = vector.broadcast %65 : f32 to vector<8x128xf32>
    %67 = arith.select %64, %66, %59 : vector<8x128xi1>, vector<8x128xf32>
    %c15 = arith.constant 15 : index
    %68 = memref.load %arg5[%c15] : memref<20xf32, #tpu.memory_space<smem>>
    %69 = vector.broadcast %68 : f32 to vector<8x128xf32>
    %70 = arith.select %64, %69, %62 : vector<8x128xi1>, vector<8x128xf32>
    %c8_i32 = arith.constant 8 : i32
    %71 = vector.broadcast %c8_i32 : i32 to vector<8x128xi32>
    %72 = arith.cmpi eq, %3, %71 : vector<8x128xi32>
    %c16 = arith.constant 16 : index
    %73 = memref.load %arg5[%c16] : memref<20xf32, #tpu.memory_space<smem>>
    %74 = vector.broadcast %73 : f32 to vector<8x128xf32>
    %75 = arith.select %72, %74, %67 : vector<8x128xi1>, vector<8x128xf32>
    %c17 = arith.constant 17 : index
    %76 = memref.load %arg5[%c17] : memref<20xf32, #tpu.memory_space<smem>>
    %77 = vector.broadcast %76 : f32 to vector<8x128xf32>
    %78 = arith.select %72, %77, %70 : vector<8x128xi1>, vector<8x128xf32>
    %c9_i32 = arith.constant 9 : i32
    %79 = vector.broadcast %c9_i32 : i32 to vector<8x128xi32>
    %80 = arith.cmpi eq, %3, %79 : vector<8x128xi32>
    %c18 = arith.constant 18 : index
    %81 = memref.load %arg5[%c18] : memref<20xf32, #tpu.memory_space<smem>>
    %82 = vector.broadcast %81 : f32 to vector<8x128xf32>
    %83 = arith.select %80, %82, %75 : vector<8x128xi1>, vector<8x128xf32>
    %c19 = arith.constant 19 : index
    %84 = memref.load %arg5[%c19] : memref<20xf32, #tpu.memory_space<smem>>
    %85 = vector.broadcast %84 : f32 to vector<8x128xf32>
    %86 = arith.select %80, %85, %78 : vector<8x128xi1>, vector<8x128xf32>
    %cst_7 = arith.constant 0.000000e+00 : f32
    %87 = vector.broadcast %cst_7 : f32 to vector<8x128xf32>
    %c0_8 = arith.constant 0 : index
    %c0_9 = arith.constant 0 : index
    %c0_10 = arith.constant 0 : index
    %88 = vector.load %arg2[%c0_8, %c0_9, %c0_10] : memref<2x8x128xf32, #tpu.memory_space<vmem>>, vector<1x8x128xf32>
    %89 = vector.shape_cast %88 : vector<1x8x128xf32> to vector<8x128xf32>
    %90 = arith.subf %89, %83 : vector<8x128xf32>
    %91 = arith.mulf %90, %90 : vector<8x128xf32>
    %92 = arith.addf %87, %91 : vector<8x128xf32>
    %c1_11 = arith.constant 1 : index
    %c0_12 = arith.constant 0 : index
    %c0_13 = arith.constant 0 : index
    %93 = vector.load %arg2[%c1_11, %c0_12, %c0_13] : memref<2x8x128xf32, #tpu.memory_space<vmem>>, vector<1x8x128xf32>
    %94 = vector.shape_cast %93 : vector<1x8x128xf32> to vector<8x128xf32>
    %95 = arith.subf %94, %86 : vector<8x128xf32>
    %96 = arith.mulf %95, %95 : vector<8x128xf32>
    %97 = arith.addf %92, %96 : vector<8x128xf32>
    %c0_14 = arith.constant 0 : index
    %c0_15 = arith.constant 0 : index
    %c0_16 = arith.constant 0 : index
    %98 = vector.load %arg6[%c0_14, %c0_15, %c0_16] : memref<1x8x128xf32, #tpu.memory_space<vmem>>, vector<1x8x128xf32>
    %99 = vector.shape_cast %98 : vector<1x8x128xf32> to vector<8x128xf32>
    %100 = arith.mulf %97, %4 : vector<8x128xf32>
    %101 = arith.addf %99, %100 : vector<8x128xf32>
    %c0_17 = arith.constant 0 : index
    %c0_18 = arith.constant 0 : index
    %c0_19 = arith.constant 0 : index
    %102 = vector.load %arg6[%c0_17, %c0_18, %c0_19] : memref<1x8x128xf32, #tpu.memory_space<vmem>>, vector<1x8x128xf32>
    %103 = vector.shape_cast %102 : vector<1x8x128xf32> to vector<8x128xf32>
    %104 = vector.shape_cast %101 : vector<8x128xf32> to vector<1x8x128xf32>
    tpu.vector_store %arg6[%c0_17, %c0_18, %c0_19], %104 {strides = array<i32>} : memref<1x8x128xf32, #tpu.memory_space<vmem>>, vector<1x8x128xf32>,
    return
  }
  func.func @transform_0(%arg0: i32, %arg1: i32) -> (i32, i32, i32) {
    %c1_i32 = arith.constant 1 : i32
    %0 = arith.muli %arg0, %c1_i32 : i32
    %1 = arith.addi %0, %arg1 : i32
    %c0_i32 = arith.constant 0 : i32
    %c0_i32_0 = arith.constant 0 : i32
    %c0_i32_1 = arith.constant 0 : i32
    return %c0_i32, %1, %c0_i32_0 : i32, i32, i32
  }
  func.func @transform_1(%arg0: i32, %arg1: i32) -> (i32, i32) {
    %c1_i32 = arith.constant 1 : i32
    %0 = arith.muli %arg0, %c1_i32 : i32
    %1 = arith.addi %0, %arg1 : i32
    %c0_i32 = arith.constant 0 : i32
    %c0_i32_0 = arith.constant 0 : i32
    return %1, %c0_i32 : i32, i32
  }
  func.func @transform_2(%arg0: i32, %arg1: i32) -> (i32, i32) {
    %c1_i32 = arith.constant 1 : i32
    %0 = arith.muli %arg0, %c1_i32 : i32
    %1 = arith.addi %0, %arg1 : i32
    %c0_i32 = arith.constant 0 : i32
    %c0_i32_0 = arith.constant 0 : i32
    return %1, %c0_i32 : i32, i32
  }
  func.func @transform_3(%arg0: i32, %arg1: i32) -> i32 {
    %c0_i32 = arith.constant 0 : i32
    %c0_i32_0 = arith.constant 0 : i32
    return %c0_i32 : i32
  }
  func.func @transform_4(%arg0: i32, %arg1: i32) -> (i32, i32, i32) {
    %c0_i32 = arith.constant 0 : i32
    %c0_i32_0 = arith.constant 0 : i32
    %c0_i32_1 = arith.constant 0 : i32
    return %arg0, %c0_i32, %c0_i32_0 : i32, i32, i32
  }
}

</mosaic_0001>

<bundles_post_ra>
// kernel: tpu_custom_call.1
= control target key start
LH: loop header
LB: loop body
LE: loop exit
PB: predicated region body
PF: predicated region fallthrough
CT: control target
= control target key end

     0   :  { %s1315_s0 = inlined_call_operand.hbm [shape: f32[2,16,128], index: 0, kind: input, shape index: {}]   ;;  %s1316_s1 = inlined_call_operand.hbm [shape: s32[16,128], index: 1, kind: input, shape index: {}]   ;;  %s1317_s2 = inlined_call_operand.hbm [shape: f32[16,128], index: 2, kind: input, shape index: {}]   ;;  %s1318_s3 = inlined_call_operand.vmem [shape: f32[20], index: 3, kind: input, shape index: {}]   ;;  %s1319_s4 = inlined_call_operand.hbm [shape: f32[2,8,128], index: 4, kind: output, shape index: {}]  }
   0x1   :  { %1330 = sst [smem:[#allocation19_spill]] %s1315_s0 }
   0x2   :  { %1331 = sst [smem:[#allocation20_spill]] %s1316_s1 }
   0x3   :  { %9 = vsyncpa [#allocation3], 0 }
   0x4   :  { %11 = vsyncpa [#allocation3 + $0x1], 0 }
   0x5   :  { %12 = vsyncpa [#allocation7], 0 }
   0x6   :  { %14 = vsyncpa [#allocation7 + $0x1], 0 }
   0x7   :  { %15 = vsyncpa [#allocation5], 0 }
   0x8   :  { %16 = vsyncpa [#allocation4], 0 }
   0x9   :  { %18 = vsyncpa [#allocation4 + $0x1], 0  ;;  %s922_s15 = smov 0   ;;  %s924_s16 = smov 0  }
   0xa   :  { %s926_s17 = smov 0   ;;  %s928_s18 = smov 0  }
   0xb   :  { %s930_s19 = smov 0   ;;  %s932_s20 = smov 0  }
   0xc LB: > { %1332 = sst [smem:[#allocation15_spill]] %s875_s17  ;;  %s36_s21 = sadd.s32 1, %s883_s19  ;;  %s887_s20 = sphi %s932_s20, %s24_s20   ;;  %s883_s19 = sphi %s930_s19, %s1360_s19   ;;  %s879_s18 = sphi %s928_s18, %s1359_s18   ;;  %s875_s17 = sphi %s926_s17, %s1358_s17   ;;  %s871_s16 = sphi %s924_s16, %s1362_s16   ;;  %s867_s15 = sphi %s922_s15, %s1361_s15  }
   0xd   : > { %1333 = sst [smem:[#allocation16_spill]] %s883_s19  ;;  %p38_p0 = scmp.ge.s32.totalorder %s36_s21, 2 }
   0xe   : > { %p1320_p1 = scmp.ne.s32.totalorder %s875_s17, %s871_s16  ;;  %p53_p2 = scmp.eq.s32.totalorder %s887_s20, 0 }
   0xf   : > { %s1364_s21 = smov (%p38_p0, %s36_s21), 0  ;;  %s45_s22 = sadd.s32 1, %s875_s17 }
  0x10   : > { %1334 = sst [smem:[#allocation17_spill]] %s1364_s21  ;;  %p54_p4 = por %p53_p2, %p1320_p1 }
  0x11   : > { %s42_s23 = ssub.s32 %s883_s19, %s1364_s21  ;;  %s966_s24 = sand.u32 1, %s875_s17  }
  0x12   : > { %p43_p5 = scmp.eq.s32.totalorder %s42_s23, 0  ;;  %p636_p6 = scmp.lt.s32.totalorder %s887_s20, 2 }
  0x13   : > { %s569_s25 = sshll.u32 %s966_s24, 4  ;;  %s971_s26 = sshll.u32 %s883_s19, 7 }
  0x14   : > { %s974_s27 = scalar_select %p43_p5, %s875_s17, %s45_s22  }
  0x15   : > { %s200_s28 = scalar_lea.vmem [#allocation2], %s569_s25  ;;  %p976_p7 = pnand %p636_p6, %p54_p4 }
  0x16   : > { %1335 = sst [smem:[#allocation18_spill]] %s974_s27  ;;  %s207_s29 = sshll.u32 %s200_s28, 4  ;;  %s987_s29 = int_to_ptr.vmem [resolvable:$true] %s207_s29 }
  0x17   : > { %s1337_s0 = sld [smem:[#allocation19_spill]]  ;;  %s217_s8 = sand.u32 1, %s887_s20  }
  0x18   : > { %s1321_s9 = sshll.u32 %s966_s24, 3  ;;  %s1338_s1 = sld [smem:[#allocation20_spill]] }
  0x19   : > { %s221_s13 = scalar_lea.vmem [#allocation6], %s1321_s9  ;;  %s1000_s22 = scalar_lea.sflag [#allocation7], %s217_s8 }
  0x1a   : > { %s229_s14 = sshll.u32 %s221_s13, 4  ;;  %p1006_p9 = pneg %p976_p7  ;;  %s998_s14 = int_to_ptr.vmem [resolvable:$true] %s229_s14 }
  0x1d   : > { %s984_s7 = scalar_lea.hbm %s1337_s0, %s971_s26 }
  0x1e   : > { %s994_s12 = scalar_lea.hbm %s1338_s1, %s971_s26  ;;  %s697_s6 = scalar_lea.hbm %s1338_s1, 256 }
  0x1f   : > { %s692_s23 = scalar_lea.hbm %s994_s12, 128  ;;  %p698_p12 = scmp.lt.u32.totalorder %s994_s12, %s1338_s1 }
  0x20   : > { %p693_p8 = scmp.ne.s32.totalorder %s994_s12, %s692_s23  ;;  %p699_p13 = scmp.lt.u32.totalorder %s697_s6, %s692_s23 }
  0x21   : > { %p701_p2 = scmp.lt.u32.totalorder %s692_s23, %s994_s12 }
  0x22   : > { %p695_p10 = pnand %p1006_p9, %p693_p8  ;;  %p700_p0 = por %p699_p13, %p698_p12 }
  0x24   : > { %p696_p11 = pneg %p695_p10  ;;  %p702_p4 = por %p701_p2, %p700_p0 }
  0x26   : > { %p703_p5 = pnand %p702_p4, %p696_p11 }
  0x28   : > { %706 = shalt.err (!%p703_p5)
}
  0x29   : > { %s707_s8 = scalar_lea.vmem %s998_s14, 128  ;;  %s889_s13 = smov [#allocation6]  }
  0x2a   : > { %p708_p6 = scmp.ne.s32.totalorder %s998_s14, %s707_s8  ;;  %s712_s28 = sshll.u32 %s889_s13, 4  ;;  %s713_s28 = int_to_ptr.vmem [resolvable:$false] %s712_s28 }
  0x2b   : > { %s714_s5 = scalar_lea.vmem %s713_s28, 256  ;;  %p715_p3 = scmp.lt.s32.totalorder %s998_s14, %s713_s28 }
  0x2c   : > { %p710_p8 = pnand %p708_p6, %p1006_p9  ;;  %p716_p1 = scmp.lt.s32.totalorder %s714_s5, %s707_s8 }
  0x2e   : > { %p711_p10 = pneg %p710_p8  ;;  %p717_p12 = por %p716_p1, %p715_p3 }
  0x30   : > { %p718_p13 = pnand %p717_p12, %p711_p10 }
  0x32   : > { %721 = shalt.err (!%p718_p13)
}
  0x33   : > { %627 = dma.hbm_to_vmem [thread:$0]  (!%p976_p7), %s994_s12, 128, %s998_s14, %s1000_s22  }
  0x34   : > { %s1031_s23 = sadd.s32 4294967295, %s887_s20   ;;  %s565_s6 = sadd.s32 4294967294, %s887_s20  }
  0x35   : > { %p58_p1 = scmp.ne.s32.totalorder %s871_s16, %s867_s15  ;;  %p1324_p3 = scmp.eq.s32.totalorder %s1031_s23, 0 }
  0x36   : > { %p159_p11 = scmp.eq.s32.totalorder %s1031_s23, 1  ;;  %p165_p0 = scmp.eq.s32.totalorder %s565_s6, 1 }
  0x37   : > { %p1040_p2 = por %p1324_p3, %p58_p1  ;;  %p566_p4 = scmp.ge.s32.totalorder %s887_s20, 1 }
  0x38   : > { %p1341_p5 = scmp.ne.s32.totalorder %s875_s17, %s871_s16  ;;  %p1052_p8 = por %p165_p0, %p58_p1 }
  0x39   : > { %s1340_s10 = scalar_select %p1040_p2, 1, 0 }
  0x3a   : > { %p1048_p6 = por %p159_p11, %p1341_p5  ;;  %p172_p10 = scmp.lt.s32.totalorder %s887_s20, 3 }
  0x3b   : > { %s1343_s14 = scalar_select %p1052_p8, 1, 0 }
  0x3c   : > { %s1342_s12 = scalar_select %p1048_p6, 1, 0 }
  0x3d   : > { %s185_s13 = sshll.u32 %s1318_s3, 4  ;;  %p1060_p12 = pnand %p566_p4, %p172_p10  ;;  %s186_s13 = int_to_ptr.vmem [resolvable:$true] %s185_s13 }
  0x3e   : > { %s197_s5 = scalar_lea.sflag [#allocation3], %s966_s24  ;;  %s722_s6 = scalar_lea.hbm %s984_s7, 256 }
  0x3f   : > { %s1344_s28 = scalar_select %p1060_p12, 1, 0 }
  0x40   : > { %p723_p11 = scmp.ne.s32.totalorder %s984_s7, %s722_s6  ;;  %s727_s21 = scalar_lea.hbm %s1337_s0, 512 }
  0x41   : > { %p728_p4 = scmp.lt.u32.totalorder %s984_s7, %s1337_s0  ;;  %p729_p5 = scmp.lt.u32.totalorder %s727_s21, %s722_s6 }
  0x42   : > { %p725_p1 = pnand %p723_p11, %p1006_p9  ;;  %p731_p3 = scmp.lt.u32.totalorder %s722_s6, %s984_s7 }
  0x43   : > { %p730_p10 = por %p729_p5, %p728_p4 }
  0x44   : > { %p726_p0 = pneg %p725_p1 }
  0x45   : > { %p732_p8 = por %p731_p3, %p730_p10 }
  0x47   : > { %p733_p6 = pnand %p732_p8, %p726_p0 }
  0x49   : > { %736 = shalt.err (!%p733_p6)
}
  0x4a   : > { %s737_s8 = scalar_lea.vmem %s987_s29, 256  ;;  %s890_s1 = smov [#allocation2]  }
  0x4b   : > { %p738_p11 = scmp.ne.s32.totalorder %s987_s29, %s737_s8  ;;  %s742_s9 = sshll.u32 %s890_s1, 4  ;;  %s743_s9 = int_to_ptr.vmem [resolvable:$false] %s742_s9 }
  0x4c   : > { %s744_s19 = scalar_lea.vmem %s743_s9, 512  ;;  %p745_p2 = scmp.lt.s32.totalorder %s987_s29, %s743_s9 }
  0x4d   : > { %p740_p1 = pnand %p738_p11, %p1006_p9  ;;  %p746_p12 = scmp.lt.s32.totalorder %s744_s19, %s737_s8 }
  0x4f   : > { %p741_p13 = pneg %p740_p1  ;;  %p747_p4 = por %p746_p12, %p745_p2 }
  0x51   : > { %p748_p5 = pnand %p747_p4, %p741_p13 }
  0x53   : > { %751 = shalt.err (!%p748_p5)
}
  0x54   : > { %s891_s21 = smov 256   ;;  %s892_s6 = smov 128  }
  0x55   : > { %s893_s11 = smov 8   ;;  %p1345_p3 = scmp.eq.s32.totalorder %s1031_s23, 0 }
  0x56   : > { %624 = dma.hbm_to_vmem [thread:$0]  (!%p976_p7), %s984_s7, 256, %s987_s29, %s197_s5, %s891_s21, %s892_s6, %s893_s11  }
  0x57   : > { %p1346_p2 = scmp.ne.s32.totalorder %s1344_s28, 0  ;;  %s1107_s27 = scalar_lea.hbm %s1317_s2, %s971_s26 }
  0x58   : > { %s1349_s17 = sshll.u32 %s966_s24, 3  ;;  %s752_s5 = scalar_lea.vmem %s186_s13, 16 }
  0x59   : > { %p1347_p6 = pneg %p1346_p2  ;;  %s240_s29 = scalar_lea.vmem [#allocation8], %s1349_s17 }
  0x5a   : > { %s248_s7 = sshll.u32 %s240_s29, 4  ;;  %p753_p12 = scmp.ne.s32.totalorder %s186_s13, %s752_s5  ;;  %s1111_s7 = int_to_ptr.vmem [resolvable:$true] %s248_s7 }
  0x5b   : > { %p1099_p8 = pnand %p1347_p6, %p1345_p3  ;;  %p760_p11 = scmp.lt.s32.totalorder %s186_s13, %s186_s13 }
  0x5c   : > { %p761_p1 = scmp.lt.s32.totalorder %s752_s5, %s752_s5 }
  0x5d   : > { %p754_p13 = pneg %p1099_p8 }
  0x5e   : > { %p762_p4 = por %p761_p1, %p760_p11 }
  0x5f   : > { %p755_p0 = pnand %p754_p13, %p753_p12 }
  0x61   : > { %p756_p10 = pneg %p755_p0 }
  0x63   : > { %p763_p5 = pnand %p762_p4, %p756_p10 }
  0x65   : > { %766 = shalt.err (!%p763_p5)
}
  0x66   : > { %s894_s0 = smov [#allocation9]   ;;  %s767_s17 = scalar_lea.hbm %s1107_s27, 128 }
  0x67   : > { %620 = dma.vmem_to_smem (!%p1099_p8), %s186_s13, 16, %s894_s0, [#allocation5]  }
  0x68   : > { %p768_p3 = scmp.ne.s32.totalorder %s1107_s27, %s767_s17  ;;  %s772_s21 = scalar_lea.hbm %s1317_s2, 256 }
  0x69   : > { %p773_p13 = scmp.lt.u32.totalorder %s1107_s27, %s1317_s2  ;;  %p774_p0 = scmp.lt.u32.totalorder %s772_s21, %s767_s17 }
  0x6a   : > { %p770_p6 = pnand %p768_p3, %p1006_p9  ;;  %p776_p11 = scmp.lt.u32.totalorder %s767_s17, %s1107_s27 }
  0x6b   : > { %p775_p10 = por %p774_p0, %p773_p13 }
  0x6c   : > { %p771_p12 = pneg %p770_p6 }
  0x6d   : > { %p777_p1 = por %p776_p11, %p775_p10 }
  0x6f   : > { %p778_p4 = pnand %p777_p1, %p771_p12 }
  0x71   : > { %781 = shalt.err (!%p778_p4)
}
  0x72   : > { %s782_s13 = scalar_lea.vmem %s1111_s7, 128  ;;  %s895_s1 = smov [#allocation8]  }
  0x73   : > { %p783_p8 = scmp.ne.s32.totalorder %s1111_s7, %s782_s13  ;;  %s787_s9 = sshll.u32 %s895_s1, 4  ;;  %s788_s9 = int_to_ptr.vmem [resolvable:$false] %s787_s9 }
  0x74   : > { %s789_s8 = scalar_lea.vmem %s788_s9, 256  ;;  %p790_p6 = scmp.lt.s32.totalorder %s1111_s7, %s788_s9 }
  0x75   : > { %p785_p5 = pnand %p783_p8, %p1006_p9  ;;  %p791_p2 = scmp.lt.s32.totalorder %s789_s8, %s782_s13 }
  0x77   : > { %p786_p3 = pneg %p785_p5  ;;  %p792_p13 = por %p791_p2, %p790_p6 }
  0x79   : > { %p793_p0 = pnand %p792_p13, %p786_p3 }
  0x7b   : > { %796 = shalt.err (!%p793_p0)
}
  0x7c   : > { %630 = dma.hbm_to_vmem [thread:$0]  (!%p976_p7), %s1107_s27, 128, %s1111_s7, %s1000_s22  }
  0x7d   : > { %p1350_p12 = scmp.ne.s32.totalorder %s1344_s28, 0 }
  0x7e   : > { %s1142_s25 = sand.u32 (!%p1350_p12), 1, %s871_s16   ;;  %p1351_p9 = scmp.ne.s32.totalorder (!%p1350_p12), %s1340_s10, 0 }
  0x7f   : > { %257 = sbr.rel (%p1350_p12) target bundleno = 183 (0xb7), region = 36  ;;  %s576_s19 = sshll.u32 (!%p1350_p12), %s1142_s25, 4 }
  0x80   : > { %s260_s29 = scalar_lea.sflag (!%p1350_p12), [#allocation3], %s1142_s25  ;;  %s1146_s5 = scalar_lea.vmem (!%p1350_p12), [#allocation2], %s576_s19 }
  0x86   : > { %850 = dma.done.wait (%p1351_p9), %s260_s29, 256  }
  0x87   : > { %852 = vsyncadd (%p1351_p9), %s260_s29, 4294967040  ;;  %s268_s27 = sand.u32 1, %s1031_s23   ;;  %s1154_s30 = sshll.u32 %s1142_s25, 3 }
  0x88   : > { %s269_s22 = scalar_lea.sflag [#allocation7], %s268_s27  ;;  %s272_s28 = scalar_lea.vmem [#allocation6], %s1154_s30 }
  0x89   : > { %854 = dma.done.wait (%p1351_p9), %s269_s22, 256  }
  0x8a   : > { %856 = vsyncadd (%p1351_p9), %s269_s22, 4294967040  ;;  %s281_s7 = scalar_lea.vmem [#allocation8], %s1154_s30  ;;  %p1352_p7 = scmp.eq.s32.totalorder %s1031_s23, 0 }
  0x8c   : > { %858 = dma.done.wait (%p1352_p7), [#allocation5], 16   ;;  %p1353_p2 = pmov %p1352_p7 }
  0x8e   : > { %860 = vsyncadd (%p1353_p2), [#allocation5], 4294967280 }
  0x8f   : > { %290 = sfence }
  0x90   : > { %v1166_v0 = vld [vmem:[%s272_s28] sm:$0xff]  ;;  %s332_s0 = sld [smem:[#allocation9]]  ;;  %s581_s17 = sld [smem:[#allocation9 + $0x1]]  ;;  %v600_v38 = vld [vmem:[%s1146_s5 + $0x8] sm:$0xff] }
  0x91   : > { %s582_s24 = sld [smem:[#allocation9 + $0x2]]  ;;  %vm331_vm0 = vcmp.eq.s32.totalorder %v1166_v0, 0  ;;  %s1169_s26 = sld [smem:[#allocation9 + $0x3]]  ;;  %vm338_vm1 = vcmp.eq.s32.totalorder %v1166_v0, 1  ;;  %vm345_vm2 = vcmp.eq.s32.totalorder %v1166_v0, 2  ;;  %vm352_vm3 = vcmp.eq.s32.totalorder %v1166_v0, 3 }
  0x92   : > { %s1171_s10 = sld [smem:[#allocation9 + $0x4]]  ;;  %s1175_s21 = sld [smem:[#allocation9 + $0x5]]  ;;  %vm359_vm4 = vcmp.eq.s32.totalorder %v1166_v0, 4  ;;  %vm366_vm5 = vcmp.eq.s32.totalorder %v1166_v0, 5  ;;  %vm373_vm6 = vcmp.eq.s32.totalorder %v1166_v0, 6  ;;  %vm380_vm7 = vcmp.eq.s32.totalorder %v1166_v0, 7 }
  0x93   : > { %s1177_s23 = sld [smem:[#allocation9 + $0x6]]  ;;  %s1180_s6 = sld [smem:[#allocation9 + $0x7]]  ;;  %vm387_vm8 = vcmp.eq.s32.totalorder %v1166_v0, 8  ;;  %vm394_vm9 = vcmp.eq.s32.totalorder %v1166_v0, 9  ;;  %v401_v33 = vld [vmem:[%s1146_s5] sm:$0xff]  ;;  %v330_v47 = vld [vmem:[%s281_s7] sm:$0xff] }
  0x94   : > { %s1183_s11 = sld [smem:[#allocation9 + $0x8]]  ;;  %s1185_s13 = sld [smem:[#allocation9 + $0x9]] }
  0x95   : > { %s1188_s1 = sld [smem:[#allocation9 + $0xa]]  ;;  %s1191_s9 = sld [smem:[#allocation9 + $0xb]] }
  0x96   : > { %v333_v1 = vstv %s332_s0  ;;  %s1193_s8 = sld [smem:[#allocation9 + $0xc]]  ;;  %v336_v3 = vstv %s581_s17  ;;  %s1199_s19 = sld [smem:[#allocation9 + $0xd]] }
  0x97   : > { %v334_v2 = vsel %vm331_vm0, %v333_v1, 0.0  ;;  %v340_v4 = vstv %s582_s24  ;;  %s1201_s29 = sld [smem:[#allocation9 + $0xe]]  ;;  %v337_v5 = vsel %vm331_vm0, %v336_v3, 0.0  ;;  %v343_v7 = vstv %s1169_s26  ;;  %s1210_s27 = sld [smem:[#allocation9 + $0xf]] }
  0x98   : > { %v341_v6 = vsel %vm338_vm1, %v340_v4, %v334_v2  ;;  %v347_v8 = vstv %s1171_s10  ;;  %s596_s22 = sld [smem:[#allocation9 + $0x10]]  ;;  %v344_v9 = vsel %vm338_vm1, %v343_v7, %v337_v5  ;;  %v350_v11 = vstv %s1175_s21  ;;  %s597_s28 = sld [smem:[#allocation9 + $0x11]] }
  0x99   : > { %v348_v10 = vsel %vm345_vm2, %v347_v8, %v341_v6  ;;  %v354_v12 = vstv %s1177_s23  ;;  %s598_s0 = sld [smem:[#allocation9 + $0x12]]  ;;  %v351_v13 = vsel %vm345_vm2, %v350_v11, %v344_v9  ;;  %v357_v15 = vstv %s1180_s6  ;;  %s599_s17 = sld [smem:[#allocation9 + $0x13]] }
  0x9a   : > { %v355_v14 = vsel %vm352_vm3, %v354_v12, %v348_v10  ;;  %v361_v16 = vstv %s1183_s11  ;;  %v358_v17 = vsel %vm352_vm3, %v357_v15, %v351_v13  ;;  %v364_v19 = vstv %s1185_s13  ;;  %s602_s5 = sshll.u32 %s879_s18, 7  ;;  %s320_s24 = scalar_lea.vmem [#allocation10], %s1154_s30 }
  0x9b   : > { %v362_v18 = vsel %vm359_vm4, %v361_v16, %v355_v14  ;;  %v368_v20 = vstv %s1188_s1  ;;  %v365_v21 = vsel %vm359_vm4, %v364_v19, %v358_v17  ;;  %v371_v23 = vstv %s1191_s9  ;;  %s428_s26 = sshll.u32 %s320_s24, 4  ;;  %s1266_s23 = scalar_lea.hbm %s1319_s4, %s602_s5  ;;  %s1268_s26 = int_to_ptr.vmem [resolvable:$true] %s428_s26 }
  0x9c   : > { %v369_v22 = vsel %vm366_vm5, %v368_v20, %v362_v18  ;;  %v375_v24 = vstv %s1193_s8  ;;  %v372_v25 = vsel %vm366_vm5, %v371_v23, %v365_v21  ;;  %v378_v27 = vstv %s1199_s19  ;;  %s415_s6 = scalar_lea.sflag [#allocation4], %s1142_s25  ;;  %s797_s11 = scalar_lea.vmem %s1268_s26, 128 }
  0x9d   : > { %v376_v26 = vsel %vm373_vm6, %v375_v24, %v369_v22  ;;  %v382_v28 = vstv %s1201_s29  ;;  %v379_v29 = vsel %vm373_vm6, %v378_v27, %v372_v25  ;;  %v385_v31 = vstv %s1210_s27  ;;  %p798_p10 = scmp.ne.s32.totalorder %s1268_s26, %s797_s11  ;;  %p1354_p11 = scmp.ne.s32.totalorder %s1342_s12, 0 }
  0x9e   : > { %v383_v30 = vsel %vm380_vm7, %v382_v28, %v376_v26  ;;  %v389_v32 = vstv %s596_s22  ;;  %v386_v34 = vsel %vm380_vm7, %v385_v31, %v379_v29  ;;  %v392_v36 = vstv %s597_s28  ;;  %s896_s18 = smov [#allocation10]  }
  0x9f   : > { %v390_v35 = vsel %vm387_vm8, %v389_v32, %v383_v30  ;;  %v396_v37 = vstv %s598_s0  ;;  %v393_v39 = vsel %vm387_vm8, %v392_v36, %v386_v34  ;;  %v399_v41 = vstv %s599_s17  ;;  %p799_p1 = pnand %p798_p10, %p1354_p11  ;;  %s801_s30 = sshll.u32 %s896_s18, 4  ;;  %s802_s30 = int_to_ptr.vmem [resolvable:$false] %s801_s30 }
  0xa0   : > { %v397_v40 = vsel %vm394_vm9, %v396_v37, %v390_v35  ;;  %v400_v42 = vsel %vm394_vm9, %v399_v41, %v393_v39  ;;  %s803_s7 = scalar_lea.vmem %s802_s30, 256  ;;  %p804_p8 = scmp.lt.s32.totalorder %s1268_s26, %s802_s30 }
  0xa1   : > { %v402_v43 = vsub.f32 %v401_v33, %v397_v40  ;;  %v407_v44 = vsub.f32 %v600_v38, %v400_v42  ;;  %p800_p4 = pneg %p799_p1  ;;  %p805_p5 = scmp.lt.s32.totalorder %s803_s7, %s797_s11 }
  0xa3   : > { %v403_v45 = vmul.f32 %v402_v43, %v402_v43  ;;  %v408_v46 = vmul.f32 %v407_v44, %v407_v44  ;;  %p806_p3 = por %p805_p5, %p804_p8 }
  0xa5   : > { %v409_v48 = vadd.f32 %v408_v46, %v403_v45  ;;  %p807_p6 = pnand %p806_p3, %p800_p4 }
  0xa7   : > { %v411_v49 = vmul.f32 %v409_v48, %v330_v47 }
  0xa9   : > { %413 = vst [vmem:[%s320_s24] sm:$0xff] %v411_v49 }
  0xaa   : > { %810 = shalt.err (!%p807_p6)
}
  0xab   : > { %s811_s25 = scalar_lea.hbm %s1266_s23, 128  ;;  %s815_s9 = scalar_lea.hbm %s1319_s4, 256 }
  0xac   : > { %p812_p13 = scmp.ne.s32.totalorder %s1266_s23, %s811_s25  ;;  %p816_p9 = scmp.lt.u32.totalorder %s1266_s23, %s1319_s4 }
  0xad   : > { %p817_p7 = scmp.lt.u32.totalorder %s815_s9, %s811_s25  ;;  %p819_p10 = scmp.lt.u32.totalorder %s811_s25, %s1266_s23 }
  0xae   : > { %p813_p0 = pnand %p812_p13, %p1354_p11 }
  0xaf   : > { %p818_p2 = por %p817_p7, %p816_p9 }
  0xb0   : > { %p814_p12 = pneg %p813_p0 }
  0xb1   : > { %p820_p1 = por %p819_p10, %p818_p2 }
  0xb3   : > { %p821_p4 = pnand %p820_p1, %p814_p12 }
  0xb5   : > { %824 = shalt.err (!%p821_p4)
}
  0xb6   : > { %615 = dma.vmem_to_hbm [thread:$0]  (%p1354_p11), %s1268_s26, 128, %s1266_s23, %s415_s6  }
  0xb7 PF: > { %s440_s29 = sand.u32 1, %s867_s15   ;;  %p1355_p8 = scmp.ne.s32.totalorder %s1343_s14, 0 }
  0xb8   : > { %p1356_p5 = scmp.ge.s32.totalorder %s887_s20, 2  ;;  %s441_s27 = scalar_lea.sflag [#allocation4], %s440_s29 }
  0xba   : > { %p632_p3 = pnand %p1356_p5, %p1355_p8 }
  0xbc   : > { %862 = dma.done.wait (!%p632_p3), %s441_s27, 128  }
  0xbd   : > { %864 = vsyncadd (!%p632_p3), %s441_s27, 4294967168  ;;  %s24_s20 = sadd.s32 1, %s887_s20   ;;  %s1357_s22 = sld [smem:[#allocation15_spill]] }
  0xbe   : > { %p21_p6 = scmp.ge.s32.totalorder %s24_s20, 4   ;;  %s1358_s17 = sld [smem:[#allocation18_spill]] }
  0xbf   : > { %s1359_s18 = sld [smem:[#allocation16_spill]]  ;;  %s1360_s19 = sld [smem:[#allocation17_spill]] }
  0xc0   : > { %s1361_s15 = smov %s871_s16  ;;  %23 = sbr.rel (!%p21_p6) target bundleno = 12 (0xc), region = 115 }
  0xc3   : > { %s1362_s16 = smov %s1357_s22 }
  0xc7   :  { %446 = vsyncpa [#allocation3], 1 }
  0xc8   :  { %448 = vsyncpa [#allocation3 + $0x1], 1 }
  0xc9   :  { %449 = vsyncpa [#allocation7], 1 }
  0xca   :  { %451 = vsyncpa [#allocation7 + $0x1], 1 }
  0xcb   :  { %452 = vsyncpa [#allocation4], 1 }
  0xcc   :  { %454 = vsyncpa [#allocation4 + $0x1], 1 }
  0xcd   :  { %455 = vsyncpa [#allocation5], 1 }
  0xce   :  { %457 = vsyncpa [#allocation5 + $0x1], 1 }

</bundles_post_ra>
